<compile_context>
chip_gen: v7x
topology: tpu7x:2x2x1
jax: 0.10.0
libtpu: 0.0.40
codegen_flags: <defaults>
</compile_context>

<pallas_src>
import functools

import jax
import jax.numpy as jnp
from jax.experimental import pallas as pl
from jax.experimental.pallas import tpu as pltpu


def _radix_softmax_kernel(x_ref, o_ref, *, radix):
    """Softmax over the radix axis with the transpose fused into the block layouts.

    x_ref: (TB, Cd, R, K)  -- input-layout block (as stored in memory)
    o_ref: (TB, R, Cd, K)  -- output-layout block (final flattened order)
    """
    # Unrolled elementwise reduction over R (R is small: 2-4). Each slice is a dense
    # (TB, Cd, K) slab, so max/exp/sum stay on full vregs (VPU/EUP), no padded-sublane
    # axis reduction.
    xs = [x_ref[:, :, r, :].astype(jnp.float32) for r in range(radix)]
    m = xs[0]
    for xr in xs[1:]:
        m = jnp.maximum(m, xr)
    es = [jnp.exp(xr - m) for xr in xs]
    s = es[0]
    for er in es[1:]:
        s = s + er
    inv = pl.reciprocal(s, approx=True)  # EUP slot, co-issues for free
    for r in range(radix):
        o_ref[:, r, :, :] = (es[r] * inv).astype(o_ref.dtype)


def _sigmoid_kernel(x_ref, o_ref):
    """Elementwise sigmoid (radix == 1 branch) on a lane-dense 2-D tile."""
    o_ref[...] = jax.nn.sigmoid(x_ref[...].astype(jnp.float32)).astype(o_ref.dtype)


def radix_softmax(x, radix, cardinality):
    """JAX/Pallas equivalent of RadixSoftmax.forward.

    x: (B, C, H, W) NCHW, like the PyTorch module.
    Returns:
      radix > 1  -> (B, C*H*W) softmax over the radix groups
      radix == 1 -> (B, C, H, W) elementwise sigmoid
    """
    batch = x.shape[0]
    if radix > 1:
        spatial = 1
        for d in x.shape[2:]:
            spatial *= d
        total = x.shape[1] * spatial
        assert total % (cardinality * radix) == 0
        K = total // (cardinality * radix)  # rchan * H * W

        # Free view: NO wrapper transpose. The permutation happens inside the kernel
        # via the differently-laid-out output BlockSpec.
        xr = x.reshape(batch, cardinality, radix, K)

        # Batch tile: cap per-block bytes (~2 MiB in+out) so double-buffered VMEM fits
        # every generation's scoped default; keep >=2 grid steps when possible so the
        # pipeline overlaps and the grid can shard across v7x's two TensorCores.
        itemsize = jnp.dtype(x.dtype).itemsize
        per_batch_bytes = cardinality * radix * K * itemsize * 2
        budget = 2 * 1024 * 1024
        tb = max(1, min(batch, budget // max(per_batch_bytes, 1)))
        if batch > 1:
            tb = max(1, min(tb, pl.cdiv(batch, 2)))
        grid = (pl.cdiv(batch, tb),)

        kernel = functools.partial(_radix_softmax_kernel, radix=radix)
        out = pl.pallas_call(
            kernel,
            out_shape=jax.ShapeDtypeStruct((batch, radix, cardinality, K), x.dtype),
            grid_spec=pltpu.PrefetchScalarGridSpec(
                num_scalar_prefetch=0,
                grid=grid,
                # Minor two dims of each block equal the full array dims, so the
                # (8,128) tiling rule is satisfied for any radix/cardinality/K/dtype.
                in_specs=[
                    pl.BlockSpec((tb, cardinality, radix, K), lambda b: (b, 0, 0, 0))
                ],
                out_specs=pl.BlockSpec(
                    (tb, radix, cardinality, K), lambda b: (b, 0, 0, 0)
                ),
            ),
            compiler_params=pltpu.CompilerParams(
                dimension_semantics=("parallel",)
            ),
        )(xr)
        # Output is already in (B, radix, cardinality, K) order -> flatten is a free view.
        return out.reshape(batch, -1)
    else:
        shape = x.shape
        F = 1
        for d in shape[1:]:
            F *= d
        x2 = x.reshape(batch, F)  # free view; lane dim = C*H*W (lane-dense for real maps)

        MAX_TF = 4096
        TF = F if F <= MAX_TF else MAX_TF          # full dim, or a multiple of 128
        TB = batch if batch <= 8 else 8            # full dim, or a multiple of 8
        # If the whole op would be a single ungridded block, split the lane dim so the
        # pipeline has >=2 steps (and megacore can shard it). F//2 stays 128-aligned.
        if pl.cdiv(batch, TB) * pl.cdiv(F, TF) == 1 and F % 256 == 0:
            TF = F // 2
        grid = (pl.cdiv(batch, TB), pl.cdiv(F, TF))

        out = pl.pallas_call(
            _sigmoid_kernel,
            out_shape=jax.ShapeDtypeStruct((batch, F), x.dtype),
            grid_spec=pltpu.PrefetchScalarGridSpec(
                num_scalar_prefetch=0,
                grid=grid,
                in_specs=[pl.BlockSpec((TB, TF), lambda i, j: (i, j))],
                out_specs=pl.BlockSpec((TB, TF), lambda i, j: (i, j)),
            ),
            compiler_params=pltpu.CompilerParams(
                dimension_semantics=("parallel", "parallel")
            ),
        )(x2)
        return out.reshape(shape)


def _radix_softmax_ref(x, radix, cardinality):
    """Pure-JAX reference mirroring the PyTorch forward exactly."""
    batch = x.shape[0]
    if radix > 1:
        xr = x.reshape(batch, cardinality, radix, -1)
        xr = jnp.transpose(xr, (0, 2, 1, 3))
        xr = jax.nn.softmax(xr, axis=1)
        return xr.reshape(batch, -1)
    else:
        return jax.nn.sigmoid(x)


if __name__ == "__main__":
    key = jax.random.PRNGKey(0)

    # radix > 1 path: B=2, cardinality=2, radix=2, rchan=16 -> C = 2*2*16 = 64, H=W=1
    radix, cardinality = 2, 2
    x = jax.random.normal(key, (2, 64, 1, 1), dtype=jnp.float32)
    out = jax.block_until_ready(radix_softmax(x, radix, cardinality))
    ref = _radix_softmax_ref(x, radix, cardinality)
    assert out.shape == ref.shape, (out.shape, ref.shape)
    # approx reciprocal -> slightly relaxed tolerance
    assert jnp.allclose(out, ref, atol=1e-2, rtol=1e-2), float(
        jnp.max(jnp.abs(out - ref))
    )

    # Larger, lane-dense radix>1 case exercising the multi-step parallel grid:
    # B=8, cardinality=1, radix=2, rchan=128 -> C = 256, H=W=1
    xb = jax.random.normal(jax.random.PRNGKey(2), (8, 256, 1, 1), dtype=jnp.float32)
    outb = jax.block_until_ready(radix_softmax(xb, 2, 1))
    refb = _radix_softmax_ref(xb, 2, 1)
    assert outb.shape == refb.shape
    assert jnp.allclose(outb, refb, atol=1e-2, rtol=1e-2)

    # radix == 1 path: elementwise sigmoid, output keeps input shape
    x2 = jax.random.normal(jax.random.PRNGKey(1), (2, 4, 16, 16), dtype=jnp.float32)
    out2 = jax.block_until_ready(radix_softmax(x2, radix=1, cardinality=1))
    ref2 = _radix_softmax_ref(x2, 1, 1)
    assert out2.shape == ref2.shape
    assert jnp.allclose(out2, ref2, atol=1e-5, rtol=1e-5)

    print("KERNEL_OK")
</pallas_src>

<mosaic_0001>
module attributes {stable_mosaic.version = 11 : i64} {
  func.func @_radix_softmax_kernel(%arg0: i32, %arg1: memref<1x2x2x16xf32, #tpu.memory_space<vmem>>, %arg2: memref<1x2x2x16xf32, #tpu.memory_space<vmem>>) attributes {dimension_semantics = [#tpu.dimension_semantics<parallel>], iteration_bounds = array<i64: 2>, scalar_prefetch = 0 : i64, scratch_operands = 0 : i64, tpu.core_type = #tpu.core_type<tc>, window_params = [{transform_indices = @transform_0, window_bounds = array<i64: 1, 2, 2, 16>}, {transform_indices = @transform_1, window_bounds = array<i64: 1, 2, 2, 16>}]} {
    %c0 = arith.constant 0 : index
    %c0_0 = arith.constant 0 : index
    %c0_1 = arith.constant 0 : index
    %c0_2 = arith.constant 0 : index
    %0 = vector.load %arg1[%c0, %c0_0, %c0_1, %c0_2] : memref<1x2x2x16xf32, #tpu.memory_space<vmem>>, vector<1x2x1x16xf32>
    %1 = vector.shape_cast %0 : vector<1x2x1x16xf32> to vector<1x2x16xf32>
    %c0_3 = arith.constant 0 : index
    %c0_4 = arith.constant 0 : index
    %c1 = arith.constant 1 : index
    %c0_5 = arith.constant 0 : index
    %2 = vector.load %arg1[%c0_3, %c0_4, %c1, %c0_5] : memref<1x2x2x16xf32, #tpu.memory_space<vmem>>, vector<1x2x1x16xf32>
    %3 = vector.shape_cast %2 : vector<1x2x1x16xf32> to vector<1x2x16xf32>
    %4 = arith.maximumf %1, %3 : vector<1x2x16xf32>
    %5 = arith.subf %1, %4 : vector<1x2x16xf32>
    %6 = math.exp %5 : vector<1x2x16xf32>
    %7 = arith.subf %3, %4 : vector<1x2x16xf32>
    %8 = math.exp %7 : vector<1x2x16xf32>
    %9 = arith.addf %6, %8 : vector<1x2x16xf32>
    %10 = tpu.reciprocal %9 {approx = true} : vector<1x2x16xf32> -> vector<1x2x16xf32>
    %11 = arith.mulf %6, %10 : vector<1x2x16xf32>
    %c0_6 = arith.constant 0 : index
    %c0_7 = arith.constant 0 : index
    %c0_8 = arith.constant 0 : index
    %c0_9 = arith.constant 0 : index
    %12 = vector.load %arg2[%c0_6, %c0_7, %c0_8, %c0_9] : memref<1x2x2x16xf32, #tpu.memory_space<vmem>>, vector<1x1x2x16xf32>
    %13 = vector.shape_cast %12 : vector<1x1x2x16xf32> to vector<1x2x16xf32>
    %14 = vector.shape_cast %11 : vector<1x2x16xf32> to vector<1x1x2x16xf32>
    tpu.vector_store %arg2[%c0_6, %c0_7, %c0_8, %c0_9], %14 {strides = array<i32>} : memref<1x2x2x16xf32, #tpu.memory_space<vmem>>, vector<1x1x2x16xf32>,
    %15 = arith.mulf %8, %10 : vector<1x2x16xf32>
    %c0_10 = arith.constant 0 : index
    %c1_11 = arith.constant 1 : index
    %c0_12 = arith.constant 0 : index
    %c0_13 = arith.constant 0 : index
    %16 = vector.load %arg2[%c0_10, %c1_11, %c0_12, %c0_13] : memref<1x2x2x16xf32, #tpu.memory_space<vmem>>, vector<1x1x2x16xf32>
    %17 = vector.shape_cast %16 : vector<1x1x2x16xf32> to vector<1x2x16xf32>
    %18 = vector.shape_cast %15 : vector<1x2x16xf32> to vector<1x1x2x16xf32>
    tpu.vector_store %arg2[%c0_10, %c1_11, %c0_12, %c0_13], %18 {strides = array<i32>} : memref<1x2x2x16xf32, #tpu.memory_space<vmem>>, vector<1x1x2x16xf32>,
    return
  }
  func.func @transform_0(%arg0: i32) -> (i32, i32, i32, i32) {
    %c0_i32 = arith.constant 0 : i32
    %c0_i32_0 = arith.constant 0 : i32
    %c0_i32_1 = arith.constant 0 : i32
    %c0_i32_2 = arith.constant 0 : i32
    return %arg0, %c0_i32, %c0_i32_0, %c0_i32_1 : i32, i32, i32, i32
  }
  func.func @transform_1(%arg0: i32) -> (i32, i32, i32, i32) {
    %c0_i32 = arith.constant 0 : i32
    %c0_i32_0 = arith.constant 0 : i32
    %c0_i32_1 = arith.constant 0 : i32
    %c0_i32_2 = arith.constant 0 : i32
    return %arg0, %c0_i32, %c0_i32_0, %c0_i32_1 : i32, i32, i32, i32
  }
}

</mosaic_0001>

<bundles_post_ra>
// kernel: tpu_custom_call.1
= control target key start
LH: loop header
LB: loop body
LE: loop exit
PB: predicated region body
PF: predicated region fallthrough
CT: control target
= control target key end

     0   :  { %6 = vsyncpa [#allocation3], 0  ;;  %s622_s0 = inlined_call_operand.hbm [shape: f32[2,2,2,16], index: 0, kind: input, shape index: {}]   ;;  %s623_s1 = inlined_call_operand.hbm [shape: f32[2,2,2,16], index: 1, kind: output, shape index: {}]  }
   0x1   :  { %8 = vsyncpa [#allocation3 + $0x1], 0 }
   0x2   :  { %9 = vsyncpa [#allocation4], 0 }
   0x3   :  { %11 = vsyncpa [#allocation4 + $0x1], 0  ;;  %s456_s6 = smov 0   ;;  %s458_s7 = smov 0  }
   0x4   :  { %s460_s8 = smov 0   ;;  %s462_s9 = smov 0  }
   0x5 LB: > { %s477_s10 = sadd.s32 4294967295, %s438_s9   ;;  %s263_s11 = sadd.s32 4294967294, %s438_s9   ;;  %s438_s9 = sphi %s462_s9, %s636_s9   ;;  %s434_s8 = sphi %s460_s8, %s635_s8   ;;  %s430_s7 = sphi %s458_s7, %s634_s7   ;;  %s426_s6 = sphi %s456_s6, %s633_s6  }
   0x6   : > { %s481_s12 = sadd.s32 1, %s438_s9   ;;  %s24_s13 = sadd.s32 1, %s434_s8 }
   0x7   : > { %s21_s14 = ssub.s32 %s438_s9, %s481_s12  ;;  %p31_p0 = scmp.ne.s32.totalorder %s434_s8, %s430_s7 }
   0x8   : > { %p22_p1 = scmp.eq.s32.totalorder %s21_s14, 0  ;;  %p32_p2 = scmp.eq.s32.totalorder %s438_s9, 0 }
   0x9   : > { %p37_p3 = scmp.ne.s32.totalorder %s430_s7, %s426_s6  ;;  %p38_p4 = scmp.eq.s32.totalorder %s477_s10, 0 }
   0xa   : > { %s493_s15 = scalar_select %p22_p1, %s434_s8, %s24_s13  }
   0xb   : > { %p495_p5 = por %p32_p2, %p31_p0  ;;  %p499_p6 = por %p38_p4, %p37_p3 }
   0xc   : > { %p61_p7 = scmp.eq.s32.totalorder %s477_s10, 1  ;;  %p67_p8 = scmp.eq.s32.totalorder %s263_s11, 1 }
   0xd   : > { %p292_p10 = scmp.lt.s32.totalorder %s438_s9, 2  ;;  %s87_s20 = sand.u32 1, %s434_s8  }
   0xe   : > { %p506_p11 = por %p61_p7, %p31_p0  ;;  %p510_p12 = por %p67_p8, %p37_p3 }
   0xf   : > { %s278_s21 = sshll.u32 %s438_s9, 6  ;;  %s266_s22 = sshll.u32 %s87_s20, 2 }
  0x10   : > { %s627_s18 = scalar_select %p506_p11, 1, 0 }
  0x11   : > { %s628_s19 = scalar_select %p510_p12, 1, 0 }
  0x12   : > { %s519_s25 = scalar_lea.hbm %s622_s0, %s278_s21  ;;  %s91_s26 = scalar_lea.vmem [#allocation2], %s266_s22 }
  0x13   : > { %s98_s27 = sshll.u32 %s91_s26, 4  ;;  %p523_p13 = pnand %p292_p10, %p495_p5  ;;  %s527_s27 = int_to_ptr.vmem [resolvable:$true] %s98_s27 }
  0x14   : > { %s529_s29 = scalar_lea.sflag [#allocation3], %s87_s20  ;;  %s342_s30 = scalar_lea.hbm %s519_s25, 64 }
  0x15   : > { %p343_p0 = scmp.ne.s32.totalorder %s519_s25, %s342_s30  ;;  %p344_p1 = pneg %p523_p13 }
  0x16   : > { %s347_s4 = scalar_lea.hbm %s622_s0, 128  ;;  %p348_p4 = scmp.lt.u32.totalorder %s519_s25, %s622_s0 }
  0x17   : > { %p345_p2 = pnand %p344_p1, %p343_p0  ;;  %p349_p5 = scmp.lt.u32.totalorder %s347_s4, %s342_s30 }
  0x18   : > { %p351_p8 = scmp.lt.u32.totalorder %s342_s30, %s519_s25 }
  0x19   : > { %p346_p3 = pneg %p345_p2  ;;  %p350_p7 = por %p349_p5, %p348_p4 }
  0x1b   : > { %p352_p10 = por %p351_p8, %p350_p7 }
  0x1d   : > { %p353_p9 = pnand %p352_p10, %p346_p3 }
  0x1f   : > { %356 = shalt.err (!%p353_p9)
}
  0x20   : > { %s357_s13 = scalar_lea.vmem %s527_s27, 64  ;;  %s440_s14 = smov [#allocation2]  }
  0x21   : > { %p358_p0 = scmp.ne.s32.totalorder %s527_s27, %s357_s13  ;;  %s362_s16 = sshll.u32 %s440_s14, 4  ;;  %s363_s16 = int_to_ptr.vmem [resolvable:$false] %s362_s16 }
  0x22   : > { %s364_s20 = scalar_lea.vmem %s363_s16, 128  ;;  %p365_p11 = scmp.lt.s32.totalorder %s527_s27, %s363_s16 }
  0x23   : > { %p360_p2 = pnand %p358_p0, %p344_p1  ;;  %p366_p4 = scmp.lt.s32.totalorder %s364_s20, %s357_s13 }
  0x25   : > { %p361_p12 = pneg %p360_p2  ;;  %p367_p5 = por %p366_p4, %p365_p11 }
  0x27   : > { %p368_p7 = pnand %p367_p5, %p361_p12 }
  0x29   : > { %371 = shalt.err (!%p368_p7)
}
  0x2a   : > { %s441_s21 = smov 32   ;;  %s442_s22 = smov 2  }
  0x2b   : > { %287 = dma.hbm_to_vmem [thread:$0]  (!%p523_p13), %s519_s25, 64, %s527_s27, %s529_s29, %s441_s21, %s441_s21, %s442_s22  }
  0x2c   : > { %p269_p9 = scmp.ge.s32.totalorder %s438_s9, 1  ;;  %p106_p1 = scmp.lt.s32.totalorder %s438_s9, 3 }
  0x2e   : > { %p107_p3 = pnand %p269_p9, %p106_p1 }
  0x2f   : > { %s560_s23 = sand.u32 (!%p107_p3), 1, %s430_s7  }
  0x30   : > { %110 = sbr.rel (%p107_p3) target bundleno = 111 (0x6f), region = 24  ;;  %s270_s24 = sshll.u32 (!%p107_p3), %s560_s23, 2 }
  0x31   : > { %s113_s26 = scalar_lea.sflag (!%p107_p3), [#allocation3], %s560_s23  ;;  %s116_s30 = scalar_lea.vmem (!%p107_p3), [#allocation2], %s270_s24 }
  0x37   : > { %417 = dma.done.wait (%p499_p6), %s113_s26, 64  }
  0x38   : > { %419 = vsyncadd (%p499_p6), %s113_s26, 4294967232  ;;  %v135_v0 = vld [vmem:[%s116_s30] sm:$0x1]  ;;  %v136_v1 = vld [vmem:[%s116_s30 + $0x2] sm:$0x1]  ;;  %s134_s17 = scalar_lea.vmem [#allocation5], %s270_s24 }
  0x39   : > { %v137_v2 = vld [vmem:[%s116_s30 + $0x1] sm:$0x1]  ;;  %v138_v3 = vld [vmem:[%s116_s30 + $0x3] sm:$0x1]  ;;  %s190_s25 = sshll.u32 %s134_s17, 4  ;;  %s279_s27 = sshll.u32 %s477_s10, 6  ;;  %s573_s25 = int_to_ptr.vmem [resolvable:$true] %s190_s25 }
  0x3a   : > { %v139_v4 = vmax.f32 %v135_v0, %v137_v2  ;;  %v140_v5 = vmax.f32 %v136_v1, %v138_v3  ;;  %vm162_vm0 = vcmask 1041409   ;;  %vm165_vm1 = vcmask 123904   ;;  %s578_s2 = scalar_lea.hbm %s623_s1, %s279_s27  ;;  %s177_s10 = scalar_lea.sflag [#allocation4], %s560_s23 }
  0x3b   : > { %s372_s3 = scalar_lea.vmem %s573_s25, 64  ;;  %p630_p11 = scmp.ne.s32.totalorder %s627_s18, 0 }
  0x3c   : > { %v141_v6 = vsub.f32 %v135_v0, %v139_v4  ;;  %v147_v7 = vsub.f32 %v137_v2, %v139_v4  ;;  %v142_v8 = vsub.f32 %v136_v1, %v140_v5  ;;  %v148_v9 = vsub.f32 %v138_v3, %v140_v5  ;;  %p373_p6 = scmp.ne.s32.totalorder %s573_s25, %s372_s3  ;;  %s443_s4 = smov [#allocation5]  }
  0x3d   : > { %s376_s5 = sshll.u32 %s443_s4, 4  ;;  %s377_s5 = int_to_ptr.vmem [resolvable:$false] %s376_s5 }
  0x3e   : > { %v143_v10 = vmul.f32 1.442695, %v141_v6  ;;  %v149_v11 = vmul.f32 1.442695, %v147_v7  ;;  %v145_v12 = vmul.f32 1.442695, %v142_v8  ;;  %p374_p12 = pnand %p373_p6, %p630_p11  ;;  %p379_p8 = scmp.lt.s32.totalorder %s573_s25, %s377_s5 }
  0x3f   : > { %v151_v13 = vmul.f32 1.442695, %v148_v9  ;;  %s378_s11 = scalar_lea.vmem %s377_s5, 128 }
  0x40   : > { %330 = vpow2.f32 %v143_v10  ;;  %p375_p13 = pneg %p374_p12  ;;  %p380_p10 = scmp.lt.s32.totalorder %s378_s11, %s372_s3 }
  0x41   : > { %332 = vpow2.f32 %v145_v12 }
  0x42   : > { %334 = vpow2.f32 %v149_v11  ;;  %p381_p0 = por %p380_p10, %p379_p8 }
  0x43   : > { %336 = vpow2.f32 %v151_v13 }
  0x44   : > { %p382_p2 = pnand %p381_p0, %p375_p13 }
  0x4a   : > { %v331_v14 = vpop.eup %330 }
  0x4b   : > { %v333_v15 = vpop.eup %332 }
  0x4c   : > { %v335_v16 = vpop.eup %334 }
  0x4d   : > { %v337_v17 = vpop.eup %336  ;;  %v153_v18 = vadd.f32 %v335_v16, %v331_v14 }
  0x4e   : > { %v154_v19 = vadd.f32 %v337_v17, %v333_v15 }
  0x4f   : > { %338 = vrcp.f32 %v153_v18 }
  0x50   : > { %340 = vrcp.f32 %v154_v19 }
  0x59   : > { %v339_v20 = vpop.eup %338 }
  0x5a   : > { %v341_v21 = vpop.eup %340  ;;  %v157_v22 = vmul.f32 %v339_v20, %v331_v14  ;;  %v167_v24 = vmul.f32 %v339_v20, %v335_v16 }
  0x5b   : > { %v158_v23 = vmul.f32 %v341_v21, %v333_v15  ;;  %v168_v25 = vmul.f32 %v341_v21, %v337_v17 }
  0x5d   : > { %v161_v26 = vrot.slane %v158_v23, 7  ;;  %v171_v27 = vrot.slane %v168_v25, 7 }
  0x5f   : > { %v163_v28 = vsel %vm162_vm0, %v161_v26, %v157_v22  ;;  %v172_v29 = vsel %vm162_vm0, %v171_v27, %v167_v24 }
  0x60   : > { %166 = vst.msk [vmem:[%s134_s17] sm:$0x3] %vm165_vm1, %v163_v28  ;;  %272 = vst.msk [vmem:[%s134_s17 + $0x2] sm:$0x3] %vm165_vm1, %v172_v29 }
  0x61   : > { %385 = shalt.err (!%p382_p2)
}
  0x62   : > { %s386_s13 = scalar_lea.hbm %s578_s2, 64  ;;  %s390_s20 = scalar_lea.hbm %s623_s1, 128 }
  0x63   : > { %p387_p4 = scmp.ne.s32.totalorder %s578_s2, %s386_s13  ;;  %p391_p9 = scmp.lt.u32.totalorder %s578_s2, %s623_s1 }
  0x64   : > { %p392_p1 = scmp.lt.u32.totalorder %s390_s20, %s386_s13  ;;  %p394_p6 = scmp.lt.u32.totalorder %s386_s13, %s578_s2 }
  0x65   : > { %p388_p5 = pnand %p387_p4, %p630_p11 }
  0x66   : > { %p393_p3 = por %p392_p1, %p391_p9 }
  0x67   : > { %p389_p7 = pneg %p388_p5 }
  0x68   : > { %p395_p12 = por %p394_p6, %p393_p3 }
  0x6a   : > { %p396_p13 = pnand %p395_p12, %p389_p7 }
  0x6c   : > { %399 = shalt.err (!%p396_p13)
}
  0x6d   : > { %s444_s24 = smov 32   ;;  %s445_s26 = smov 2  }
  0x6e   : > { %282 = dma.vmem_to_hbm [thread:$0]  (%p630_p11), %s573_s25, 64, %s578_s2, %s177_s10, %s444_s24, %s444_s24, %s445_s26  }
  0x6f PF: > { %s205_s30 = sand.u32 1, %s426_s6   ;;  %p631_p8 = scmp.ne.s32.totalorder %s628_s19, 0 }
  0x70   : > { %p632_p10 = scmp.ge.s32.totalorder %s438_s9, 2  ;;  %s206_s17 = scalar_lea.sflag [#allocation4], %s205_s30 }
  0x72   : > { %p289_p0 = pnand %p632_p10, %p631_p8 }
  0x74   : > { %421 = dma.done.wait (!%p289_p0), %s206_s17, 64  }
  0x75   : > { %423 = vsyncadd (!%p289_p0), %s206_s17, 4294967232  ;;  %p14_p2 = scmp.ge.s32.totalorder %s481_s12, 4   ;;  %s633_s6 = smov %s430_s7 }
  0x76   : > { %s634_s7 = smov %s434_s8  ;;  %s635_s8 = smov %s493_s15 }
  0x77   : > { %s636_s9 = smov %s481_s12  ;;  %16 = sbr.rel (!%p14_p2) target bundleno = 5 (0x5), region = 70 }
  0x7e   :  { %211 = vsyncpa [#allocation3], 1 }
  0x7f   :  { %213 = vsyncpa [#allocation3 + $0x1], 1 }
  0x80   :  { %214 = vsyncpa [#allocation4], 1 }
  0x81   :  { %216 = vsyncpa [#allocation4 + $0x1], 1 }

</bundles_post_ra>
